<compile_context>
chip_gen: v6e
topology: v6e:2x2x1
jax: 0.10.0
libtpu: 0.0.40
codegen_flags: <defaults>
</compile_context>

<pallas_src>
import jax
import jax.numpy as jnp
from jax.experimental import pallas as pl
from jax.experimental.pallas import tpu as pltpu


def _round_up(n, m):
    return ((n + m - 1) // m) * m


def _choose_tile_m(batch, cap=2048):
    """Batch tile size.

    * Large tiles amortize the ~0.35us/grid-step pipeline overhead on the
      single-TC v5e/v6e,
    * but keep >=2 grid steps whenever the batch allows so that
      dimension_semantics=("parallel",) shards the batch over both v7x TCs,
    * multiples of 128 keep blocks lane/sublane aligned (a block equal to the
      full batch is used when batch <= 128, which is always legal).

    VMEM at the cap, lane-padded accounting: a (tm, 16) f32 x tile occupies
    tm*128*4 B per buffer (16 lanes pad to 128), the f32 hidden tile is
    tm*128*4 B, and the double-buffered output is <= tm*128*4 B, so tm=2048
    stays ~6 MiB -- comfortably inside the 32 MiB scoped limit (v7x-safe).
    """
    if batch <= 128:
        return batch
    return min(cap, _round_up(pl.cdiv(batch, 2), 128))


def _mlp_kernel_nout1_t(xt_ref, w1t_ref, b1_ref, w2_ref, b2_ref, o_ref):
    """Transposed fused MLP for nout == 1 (lane-dense output).

    xt_ref : (D, TM)  bf16  x^T batch tile (batch on lanes -> lane-dense DMA)
    w1t_ref: (H, D)   bf16  W1^T, VMEM-resident across grid steps
    b1_ref : (H, 1)   f32
    w2_ref : (1, H)   bf16  second-layer row
    b2_ref : (1, 1)   f32
    o_ref  : (1, TM)  lane-dense output tile (full vst, no masked 1-lane stores)
    """
    # Layer 1 on the MXU: (H, D) @ (D, TM) -> (H, TM), f32 accumulation.
    h = jnp.dot(w1t_ref[...], xt_ref[...], preferred_element_type=jnp.float32)
    # Bias + ReLU on the VPU in f32 (v5e has no bf16 VPU path).
    h = jnp.maximum(h + b1_ref[...], 0.0)
    # Layer 2 on the MXU as a K=H contraction: (1, H) @ (H, TM) -> (1, TM).
    # Replaces the previous VPU-multiply + XLU cross-lane reduce and the
    # per-row masked (TM, 1) stores.
    out = jnp.dot(w2_ref[...], h.astype(w2_ref.dtype),
                  preferred_element_type=jnp.float32) + b2_ref[...]
    o_ref[...] = out.astype(o_ref.dtype)


def _mlp_kernel_mxu_out(x_ref, w1_ref, b1_ref, w2_ref, b2_ref, o_ref):
    """Fused MLP for nout > 1 (natural layout, lane-dense out when nout >= 128).

    x_ref arrives in f32 and is cast to bf16 in-kernel so the wrapper never
    makes a separate HBM cast pass over x.
    """
    x = x_ref[...].astype(jnp.bfloat16)
    h = jnp.dot(x, w1_ref[...], preferred_element_type=jnp.float32)
    h = jnp.maximum(h + b1_ref[...], 0.0)       # f32 elementwise (v5e-safe)
    out = jnp.dot(h.astype(w2_ref.dtype), w2_ref[...],
                  preferred_element_type=jnp.float32) + b2_ref[...]
    o_ref[...] = out.astype(o_ref.dtype)


def prepare_params(params):
    """One-time conversion of f32 (in, out)-layout parameters into kernel-ready
    operands.  Do this once at init so the per-call wrapper issues no weight
    casts/reshapes (review feedback: don't re-cast w1/w2 every forward)."""
    (w1, b1), (w2, b2) = params
    _, H = w1.shape
    nout = w2.shape[1]
    if nout == 1:
        return {
            "w1t": jnp.asarray(w1.T, jnp.bfloat16),            # (H, D)
            "b1": jnp.asarray(b1.reshape(H, 1), jnp.float32),   # column bias
            "w2": jnp.asarray(w2.reshape(1, H), jnp.bfloat16),  # row vector
            "b2": jnp.asarray(b2.reshape(1, 1), jnp.float32),
        }
    return {
        "w1": jnp.asarray(w1, jnp.bfloat16),                    # (D, H)
        "b1": jnp.asarray(b1.reshape(1, H), jnp.float32),
        "w2": jnp.asarray(w2, jnp.bfloat16),                    # (H, nout)
        "b2": jnp.asarray(b2.reshape(1, nout), jnp.float32),
    }


def nn_forward(x, prepared, *, tile_m=2048):
    """Pallas fused forward of NN(dim, num_hiddens=[H], nout).

    x: (B, D) f32.  `prepared` comes from prepare_params().  No padding of x,
    no wrapper-side cast pass for the nout>1 path; the nout==1 path makes a
    single fused transpose+cast pass to obtain the lane-dense x^T layout.
    """
    B, D = x.shape
    tm = _choose_tile_m(B, cap=tile_m)
    grid = (pl.cdiv(B, tm),)          # ragged last block: reads clipped/garbage
                                      # only in OOB rows, writes clipped by Pallas
    cparams = pltpu.CompilerParams(
        dimension_semantics=("parallel",),      # batch axis -> both TCs on v7x
        vmem_limit_bytes=32 * 1024 * 1024,      # matches v7x scoped default
    )
    # NOTE: the weight/bias operands below use constant index_maps so they stay
    # VMEM-resident; they total <100 KiB so the default double-buffering is
    # harmless (single-buffering via pipeline_mode would save only a few KiB).

    if "w1t" in prepared:             # ---- nout == 1: transposed, lane-dense
        w1t, b1, w2, b2 = (prepared["w1t"], prepared["b1"],
                           prepared["w2"], prepared["b2"])
        H = w1t.shape[0]
        # Single fused transpose+cast pass over x (the only wrapper-side op on x).
        xt = x.T.astype(jnp.bfloat16)                         # (D, B)
        out_t = pl.pallas_call(
            _mlp_kernel_nout1_t,
            out_shape=jax.ShapeDtypeStruct((1, B), x.dtype),
            grid=grid,
            in_specs=[
                pl.BlockSpec((D, tm), lambda i: (0, i)),      # batch-tiled x^T
                pl.BlockSpec((H, D), lambda i: (0, 0)),       # resident W1^T
                pl.BlockSpec((H, 1), lambda i: (0, 0)),       # resident b1
                pl.BlockSpec((1, H), lambda i: (0, 0)),       # resident w2 row
                pl.BlockSpec((1, 1), lambda i: (0, 0)),       # resident b2
            ],
            out_specs=pl.BlockSpec((1, tm), lambda i: (0, i)),  # lane-dense
            compiler_params=cparams,
        )(xt, w1t, b1, w2, b2)
        return out_t.reshape(B, 1)    # contiguous (1, B) -> (B, 1): free

    # ---- nout > 1: natural layout, MXU second layer -------------------------
    w1, b1, w2, b2 = (prepared["w1"], prepared["b1"],
                      prepared["w2"], prepared["b2"])
    H = w1.shape[1]
    nout = w2.shape[1]
    return pl.pallas_call(
        _mlp_kernel_mxu_out,
        out_shape=jax.ShapeDtypeStruct((B, nout), x.dtype),
        grid=grid,
        in_specs=[
            pl.BlockSpec((tm, D), lambda i: (i, 0)),          # batch-tiled x (f32)
            pl.BlockSpec((D, H), lambda i: (0, 0)),           # resident W1
            pl.BlockSpec((1, H), lambda i: (0, 0)),           # resident b1
            pl.BlockSpec((H, nout), lambda i: (0, 0)),        # resident W2
            pl.BlockSpec((1, nout), lambda i: (0, 0)),        # resident b2
        ],
        out_specs=pl.BlockSpec((tm, nout), lambda i: (i, 0)),
        compiler_params=cparams,
    )(x, w1, b1, w2, b2)


def init_params(key, dim, num_hiddens, nout):
    """Deterministic init mirroring the PyTorch module:
    xavier_uniform_ on Linear weights, PyTorch-default uniform bias."""
    params = []
    pre = dim
    dims = list(num_hiddens) + [nout]
    for d_out in dims:
        key, kw, kb = jax.random.split(key, 3)
        bound_w = jnp.sqrt(6.0 / (pre + d_out))          # xavier_uniform_
        w = jax.random.uniform(kw, (pre, d_out), jnp.float32,
                               minval=-bound_w, maxval=bound_w)
        bound_b = 1.0 / jnp.sqrt(float(pre))             # nn.Linear default bias
        b = jax.random.uniform(kb, (d_out,), jnp.float32,
                               minval=-bound_b, maxval=bound_b)
        params.append((w, b))
        pre = d_out
    return params


def reference_forward(x, params):
    """Pure-JAX reference mirroring the kernel numerics
    (bf16 matmul operands, f32 accumulation / elementwise)."""
    (w1, b1), (w2, b2) = params
    h = jnp.dot(x.astype(jnp.bfloat16), w1.astype(jnp.bfloat16),
                preferred_element_type=jnp.float32) + b1
    h = jnp.maximum(h, 0.0)
    out = jnp.dot(h.astype(jnp.bfloat16), w2.astype(jnp.bfloat16),
                  preferred_element_type=jnp.float32) + b2
    return out


if __name__ == "__main__":
    D, H = 16, 128
    root = jax.random.PRNGKey(0)

    def run_case(batch, nout, tag):
        kcase = jax.random.fold_in(root, tag)
        kx, kw = jax.random.split(kcase)
        x = jax.random.normal(kx, (batch, D), jnp.float32)
        params = init_params(kw, D, [H], nout)
        prepared = prepare_params(params)          # one-time weight prep
        out = jax.block_until_ready(nn_forward(x, prepared))
        ref = reference_forward(x, params)
        assert out.shape == (batch, nout), out.shape
        err = float(jnp.max(jnp.abs(out - ref)))
        assert jnp.allclose(out, ref, atol=2e-3, rtol=2e-3), err

    # nout == 1 (module default): tiny single-block case, then a ragged
    # two-step batch grid (exercises the cdiv grid + clipped last block).
    run_case(32, 1, 0)
    run_case(1000, 1, 1)
    # nout > 1 head: lane-dense MXU-output path.
    run_case(1000, 128, 2)

    print("KERNEL_OK")
</pallas_src>

<mosaic_0001>
module attributes {stable_mosaic.version = 11 : i64} {
  func.func @_mlp_kernel_nout1_t(%arg0: i32, %arg1: memref<16x32xbf16, #tpu.memory_space<vmem>>, %arg2: memref<128x16xbf16, #tpu.memory_space<vmem>>, %arg3: memref<128x1xf32, #tpu.memory_space<vmem>>, %arg4: memref<1x128xbf16, #tpu.memory_space<vmem>>, %arg5: memref<1x1xf32, #tpu.memory_space<vmem>>, %arg6: memref<1x32xf32, #tpu.memory_space<vmem>>) attributes {dimension_semantics = [#tpu.dimension_semantics<parallel>], iteration_bounds = array<i64: 1>, scalar_prefetch = 0 : i64, scratch_operands = 0 : i64, tpu.core_type = #tpu.core_type<tc>, window_params = [{transform_indices = @transform_0, window_bounds = array<i64: 16, 32>}, {pipeline_mode = #tpu.pipeline_mode<synchronous>, transform_indices = @transform_1, window_bounds = array<i64: 128, 16>}, {pipeline_mode = #tpu.pipeline_mode<synchronous>, transform_indices = @transform_2, window_bounds = array<i64: 128, 1>}, {pipeline_mode = #tpu.pipeline_mode<synchronous>, transform_indices = @transform_3, window_bounds = array<i64: 1, 128>}, {pipeline_mode = #tpu.pipeline_mode<synchronous>, transform_indices = @transform_4, window_bounds = array<i64: 1, 1>}, {transform_indices = @transform_5, window_bounds = array<i64: 1, 32>}]} {
    %c0 = arith.constant 0 : index
    %c0_0 = arith.constant 0 : index
    %0 = vector.load %arg2[%c0, %c0_0] : memref<128x16xbf16, #tpu.memory_space<vmem>>, vector<128x16xbf16>
    %c0_1 = arith.constant 0 : index
    %c0_2 = arith.constant 0 : index
    %1 = vector.load %arg1[%c0_1, %c0_2] : memref<16x32xbf16, #tpu.memory_space<vmem>>, vector<16x32xbf16>
    %cst = arith.constant dense<0.000000e+00> : vector<128x32xf32>
    %2 = tpu.matmul %0, %1, %cst {dimension_numbers = #tpu.dot_dimension_numbers<[1], [0], [0], [1], [0, 0, 1, 1], [], []>} : vector<128x16xbf16>, vector<16x32xbf16>, vector<128x32xf32> -> vector<128x32xf32>
    %c0_3 = arith.constant 0 : index
    %c0_4 = arith.constant 0 : index
    %3 = vector.load %arg3[%c0_3, %c0_4] : memref<128x1xf32, #tpu.memory_space<vmem>>, vector<128x1xf32>
    %4 = vector.broadcast %3 : vector<128x1xf32> to vector<128x32xf32>
    %5 = arith.addf %2, %4 : vector<128x32xf32>
    %cst_5 = arith.constant 0.000000e+00 : f32
    %6 = vector.broadcast %cst_5 : f32 to vector<128x32xf32>
    %7 = arith.maximumf %5, %6 : vector<128x32xf32>
    %c0_6 = arith.constant 0 : index
    %c0_7 = arith.constant 0 : index
    %8 = vector.load %arg4[%c0_6, %c0_7] : memref<1x128xbf16, #tpu.memory_space<vmem>>, vector<1x128xbf16>
    %9 = arith.truncf %7 : vector<128x32xf32> to vector<128x32xbf16>
    %cst_8 = arith.constant dense<0.000000e+00> : vector<1x32xf32>
    %10 = tpu.matmul %8, %9, %cst_8 {dimension_numbers = #tpu.dot_dimension_numbers<[1], [0], [0], [1], [0, 0, 1, 1], [], []>} : vector<1x128xbf16>, vector<128x32xbf16>, vector<1x32xf32> -> vector<1x32xf32>
    %c0_9 = arith.constant 0 : index
    %c0_10 = arith.constant 0 : index
    %11 = vector.load %arg5[%c0_9, %c0_10] : memref<1x1xf32, #tpu.memory_space<vmem>>, vector<1x1xf32>
    %12 = vector.broadcast %11 : vector<1x1xf32> to vector<1x32xf32>
    %13 = arith.addf %10, %12 : vector<1x32xf32>
    %c0_11 = arith.constant 0 : index
    %c0_12 = arith.constant 0 : index
    %14 = vector.load %arg6[%c0_11, %c0_12] : memref<1x32xf32, #tpu.memory_space<vmem>>, vector<1x32xf32>
    tpu.vector_store %arg6[%c0_11, %c0_12], %13 {strides = array<i32>} : memref<1x32xf32, #tpu.memory_space<vmem>>, vector<1x32xf32>,
    return
  }
  func.func @transform_0(%arg0: i32) -> (i32, i32) {
    %c0_i32 = arith.constant 0 : i32
    %c0_i32_0 = arith.constant 0 : i32
    return %c0_i32, %arg0 : i32, i32
  }
  func.func @transform_1(%arg0: i32) -> (i32, i32) {
    %c0_i32 = arith.constant 0 : i32
    %c0_i32_0 = arith.constant 0 : i32
    %c0_i32_1 = arith.constant 0 : i32
    return %c0_i32, %c0_i32_0 : i32, i32
  }
  func.func @transform_2(%arg0: i32) -> (i32, i32) {
    %c0_i32 = arith.constant 0 : i32
    %c0_i32_0 = arith.constant 0 : i32
    %c0_i32_1 = arith.constant 0 : i32
    return %c0_i32, %c0_i32_0 : i32, i32
  }
  func.func @transform_3(%arg0: i32) -> (i32, i32) {
    %c0_i32 = arith.constant 0 : i32
    %c0_i32_0 = arith.constant 0 : i32
    %c0_i32_1 = arith.constant 0 : i32
    return %c0_i32, %c0_i32_0 : i32, i32
  }
  func.func @transform_4(%arg0: i32) -> (i32, i32) {
    %c0_i32 = arith.constant 0 : i32
    %c0_i32_0 = arith.constant 0 : i32
    %c0_i32_1 = arith.constant 0 : i32
    return %c0_i32, %c0_i32_0 : i32, i32
  }
  func.func @transform_5(%arg0: i32) -> (i32, i32) {
    %c0_i32 = arith.constant 0 : i32
    %c0_i32_0 = arith.constant 0 : i32
    return %c0_i32, %arg0 : i32, i32
  }
}

</mosaic_0001>

<bundles_post_ra>
// kernel: tpu_custom_call.1
= control target key start
LH: loop header
LB: loop body
LE: loop exit
PB: predicated region body
PF: predicated region fallthrough
CT: control target
= control target key end

     0   :  { %s651_s0 = inlined_call_operand.vmem [shape: bf16[16,32], index: 0, kind: input, shape index: {}]   ;;  %s652_s1 = inlined_call_operand.vmem [shape: bf16[128,16], index: 1, kind: input, shape index: {}]   ;;  %s653_s2 = inlined_call_operand.vmem [shape: f32[128,1], index: 2, kind: input, shape index: {}]   ;;  %s654_s3 = inlined_call_operand.vmem [shape: bf16[1,128], index: 3, kind: input, shape index: {}]   ;;  %s655_s4 = inlined_call_operand.<no memory space> [shape: f32[1,1], index: 4, kind: input, shape index: {}]   ;;  %s656_s5 = inlined_call_operand.hbm [shape: f32[1,32], index: 5, kind: output, shape index: {}]  }
   0x1   :  { %v10_v0 = vstv %s655_s4 }
   0x2   :  { %11 = vst [vmem:[#allocation2] sm:$0x1] %v10_v0 }
   0x3   :  { %v476_v1 = vld [vmem:[%s651_s0] sm:$0xff]   ;;  %vm184_vm0 = vcmask 130048   ;;  %v478_v3 = vld [vmem:[%s652_s1 + $0x8] sm:$0xff]   ;;  %v507_v4 = vmov 0   ;;  %v479_v5 = vld [vmem:[%s652_s1 + $0x10] sm:$0xff]  }
   0x4   :  { %v477_v2 = vld [vmem:[%s652_s1] sm:$0xff]   ;;  %432 = vmatprep.subr.bf16.mxu0 %v476_v1  ;;  %474 = vset.pattern.permute.xlu0 %v507_v4  ;;  %v56_v6 = vld [vmem:[%s653_s2 + $0x70] sm:$0xff]  ;;  %v480_v8 = vld [vmem:[%s652_s1 + $0x18] sm:$0xff]  }
   0x5   :  { %433 = vmatpush3.bf16.msra.mxu0 %v476_v1  ;;  %434 = vmatprep.mubr.msk.bf16.mxu0 %vm184_vm0, %v477_v2  ;;  %v54_v7 = vld [vmem:[%s653_s2 + $0x60] sm:$0xff]  ;;  %v57_v10 = vld [vmem:[%s653_s2 + $0x78] sm:$0xff]  ;;  %v55_v11 = vld [vmem:[%s653_s2 + $0x68] sm:$0xff] }
   0x6   :  { %475 = vset.pattern.permute.xlu1 %v507_v4  ;;  %130 = vperm.xlu0 %474, %v56_v6   ;;  %v481_v9 = vld [vmem:[%s652_s1 + $0x20] sm:$0xff]  }
   0x7   :  { %120 = vperm.xlu1 %475, %v54_v7  }
   0x8   :  { %435 = vmatmul.mubr.msk.bf16.vlgmr.msra.gmra.mxu0 %vm184_vm0, %v478_v3 }
   0x9   :  { %438 = vmatprep.mubr.msk.bf16.mxu0 %vm184_vm0, %v479_v5 }
   0xa   :  { %135 = vperm.xlu0 %474, %v57_v10  }
  0x10   :  { %439 = vmatmul.mubr.msk.bf16.gmra.mxu0 %vm184_vm0, %v480_v8 }
  0x11   :  { %12 = vsyncpa [#allocation4], 0  ;;  %442 = vmatprep.mubr.msk.bf16.mxu0 %vm184_vm0, %v481_v9  ;;  %125 = vperm.xlu1 %475, %v55_v11   ;;  %v52_v12 = vld [vmem:[%s653_s2 + $0x50] sm:$0xff]  ;;  %v53_v13 = vld [vmem:[%s653_s2 + $0x58] sm:$0xff]  ;;  %v508_v28 = vmov 0.0   ;;  %vm509_vm1 = vmmov 0  }
  0x12   :  { %v482_v14 = vld [vmem:[%s652_s1 + $0x28] sm:$0xff]   ;;  %110 = vperm.xlu0 %474, %v52_v12   ;;  %v483_v15 = vld [vmem:[%s652_s1 + $0x30] sm:$0xff]   ;;  %v50_v16 = vld [vmem:[%s653_s2 + $0x40] sm:$0xff]  ;;  %450 = vmatprep.subr.bf16.mxu1 %v508_v28  ;;  %s510_s16 = smov [#allocation3]   ;;  %vm381_vm2 = vcmask 253952  }
  0x13   :  { %v51_v17 = vld [vmem:[%s653_s2 + $0x48] sm:$0xff]  ;;  %v48_v18 = vld [vmem:[%s653_s2 + $0x30] sm:$0xff]  ;;  %v49_v19 = vld [vmem:[%s653_s2 + $0x38] sm:$0xff]  ;;  %466 = vmatprep.mubr.msk.bf16.mxu1 %vm509_vm1, %v508_v28  ;;  %s389_s17 = sshll.u32 %s510_s16, 4  ;;  %s390_s17 = int_to_ptr.vmem [resolvable:$true] %s389_s17 }
  0x14   :  { %v484_v20 = vld [vmem:[%s652_s1 + $0x38] sm:$0xff]   ;;  %v46_v21 = vld [vmem:[%s653_s2 + $0x20] sm:$0xff]  ;;  %v47_v22 = vld [vmem:[%s653_s2 + $0x28] sm:$0xff]  ;;  %s485_s18 = scalar_lea.vmem %s390_s17, 16  ;;  %s489_s19 = scalar_lea.vmem %s390_s17, 32 }
  0x15   :  { %115 = vperm.xlu1 %475, %v53_v13   ;;  %v44_v23 = vld [vmem:[%s653_s2 + $0x10] sm:$0xff]  ;;  %v45_v24 = vld [vmem:[%s653_s2 + $0x18] sm:$0xff]  ;;  %v42_v25 = vld [vmem:[%s653_s2] sm:$0xff]  ;;  %p486_p0 = scmp.ne.s32.totalorder %s390_s17, %s485_s18  ;;  %p490_p1 = scmp.lt.s32.totalorder %s390_s17, %s390_s17 }
  0x16   :  { %100 = vperm.xlu0 %474, %v50_v16   ;;  %v43_v26 = vld [vmem:[%s653_s2 + $0x8] sm:$0xff]  ;;  %v331_v27 = vld [vmem:[#allocation2] sm:$0x1]  ;;  %p491_p2 = scmp.lt.s32.totalorder %s489_s19, %s485_s18 }
  0x18   :  { %443 = vmatmul.mubr.msk.bf16.gmra.mxu0 %vm184_vm0, %v482_v14  ;;  %p492_p3 = por %p491_p2, %p490_p1 }
  0x19   :  { %446 = vmatprep.mubr.msk.bf16.mxu0 %vm184_vm0, %v483_v15  ;;  %105 = vperm.xlu1 %475, %v51_v17  }
  0x1a   :  { %90 = vperm.xlu0 %474, %v48_v18   ;;  %p493_p4 = pnand %p492_p3, %p486_p0 }
  0x1d   :  { %95 = vperm.xlu1 %475, %v49_v19  }
  0x1e   :  { %80 = vperm.xlu0 %474, %v46_v21  }
  0x20   :  { %447 = vmatmul.mubr.msk.bf16.gmra.mxu0 %vm184_vm0, %v484_v20 }
  0x21   :  { %85 = vperm.xlu1 %475, %v47_v22  }
  0x22   :  { %70 = vperm.xlu0 %474, %v44_v23  }
  0x25   :  { %75 = vperm.xlu1 %475, %v45_v24  }
  0x26   :  { %60 = vperm.xlu0 %474, %v42_v25  }
  0x29   :  { %65 = vperm.xlu1 %475, %v43_v26  }
  0x2a   :  { %334 = vperm.xlu0 %474, %v331_v27  }
  0x81   :  { %v131_v35 = vpop.permute.xlu0 %130 }
  0x82   :  { %v121_v33 = vpop.permute.xlu1 %120 }
  0x85   :  { %v136_v40 = vpop.permute.xlu0 %135 }
  0x8c   :  { %v126_v38 = vpop.permute.xlu1 %125 }
  0x8d   :  { %v111_v45 = vpop.permute.xlu0 %110 }
  0x90   :  { %v116_v43 = vpop.permute.xlu1 %115 }
  0x91   :  { %v101_v51 = vpop.permute.xlu0 %100 }
  0x94   :  { %v106_v48 = vpop.permute.xlu1 %105 }
  0x95   :  { %v91_v63 = vpop.permute.xlu0 %90 }
  0x98   :  { %v96_v59 = vpop.permute.xlu1 %95 }
  0x99   :  { %v81_v8 = vpop.permute.xlu0 %80 }
  0x9c   :  { %v86_v5 = vpop.permute.xlu1 %85 }
  0x9d   :  { %v71_v18 = vpop.permute.xlu0 %70 }
  0xa0   :  { %v76_v14 = vpop.permute.xlu1 %75 }
  0xa1   :  { %v61_v27 = vpop.permute.xlu0 %60 }
  0xa4   :  { %v66_v24 = vpop.permute.xlu1 %65 }
  0xc8   :  { %v629_v29 = vpop.f32.mrf.mxu0 }
  0xc9   :  { %v252_v25 = vadd.f32 %v629_v29, %v71_v18 }
  0xca   :  { %v631_v30 = vpop.f32.mrf.mxu0 }
  0xcc   :  { %v437_v31 = vpop.f32.mrf.mxu0 }
  0xcd   :  { %v255_v21 = vadd.f32 %v437_v31, %v76_v14 }
  0xce   :  { %v633_v32 = vpop.f32.mrf.mxu0 }
  0xd0   :  { %v440_v34 = vpop.f32.mrf.mxu0 }
  0xd1   :  { %v268_v12 = vadd.f32 %v440_v34, %v91_v63  ;;  %v247_v34 = vadd.f32 %v633_v32, %v66_v24  ;;  %v337_v32 = vlaneseq }
  0xd2   :  { %v259_v36 = vpop.f32.mrf.mxu0 }
  0xd3   :  { %v312_v19 = vmax.f32 %v268_v12, 0.0  ;;  %v260_v20 = vadd.f32 %v259_v36, %v81_v8  ;;  %v244_v36 = vadd.f32 %v631_v30, %v61_v27  ;;  %v335_v30 = vpop.permute.xlu0 %334 }
  0xd4   :  { %v441_v37 = vpop.f32.mrf.mxu0 }
  0xd5   :  { %v271_v9 = vadd.f32 %v441_v37, %v96_v59  ;;  %v310_v26 = vmax.f32 %v260_v20, 0.0  ;;  %v308_v37 = vmax.f32 %v252_v25, 0.0 }
  0xd6   :  { %v262_v39 = vpop.f32.mrf.mxu0 }
  0xd7   :  { %v313_v15 = vmax.f32 %v271_v9, 0.0  ;;  %v263_v16 = vadd.f32 %v262_v39, %v86_v5  ;;  %v306_v39 = vmax.f32 %v244_v36, 0.0 }
  0xd8   :  { %v444_v41 = vpop.f32.mrf.mxu0 }
  0xd9   :  { %v284_v0 = vadd.f32 %v444_v41, %v111_v45  ;;  %v326_v22 = vpack.c.bf16 %v313_v15, %v312_v19  ;;  %v311_v23 = vmax.f32 %v263_v16, 0.0  ;;  %v338_v41 = vshrl.u32 %v337_v32, 7 }
  0xda   :  { %v275_v42 = vpop.f32.mrf.mxu0 }
  0xdb   :  { %v316_v6 = vmax.f32 %v284_v0, 0.0  ;;  %v276_v7 = vadd.f32 %v275_v42, %v101_v51  ;;  %v339_v42 = vsub.s32 0, %v338_v41 }
  0xdc   :  { %v445_v44 = vpop.f32.mrf.mxu0 }
  0xdd   :  { %v287_v60 = vadd.f32 %v445_v44, %v116_v43  ;;  %v314_v13 = vmax.f32 %v276_v7, 0.0  ;;  %v340_v43 = vrot.slane %v335_v30, %v339_v42 }
  0xde   :  { %v278_v46 = vpop.f32.mrf.mxu0 }
  0xdf   :  { %v317_v2 = vmax.f32 %v287_v60, 0.0  ;;  %v279_v3 = vadd.f32 %v278_v46, %v106_v48 }
  0xe0   :  { %v448_v47 = vpop.f32.mrf.mxu0 }
  0xe1   :  { %v300_v50 = vadd.f32 %v448_v47, %v131_v35  ;;  %v328_v10 = vpack.c.bf16 %v317_v2, %v316_v6  ;;  %v315_v11 = vmax.f32 %v279_v3, 0.0  ;;  %v325_v35 = vpack.c.bf16 %v311_v23, %v310_v26 }
  0xe2   :  { %v291_v49 = vpop.f32.mrf.mxu0 }
  0xe3   :  { %v320_v55 = vmax.f32 %v300_v50, 0.0  ;;  %v292_v56 = vadd.f32 %v291_v49, %v121_v33  ;;  %v327_v17 = vpack.c.bf16 %v315_v11, %v314_v13  ;;  %v309_v33 = vmax.f32 %v255_v21, 0.0 }
  0xe4   :  { %v449_v52 = vpop.f32.mrf.mxu0 }
  0xe5   :  { %v303_v53 = vadd.f32 %v449_v52, %v136_v40  ;;  %v318_v1 = vmax.f32 %v292_v56, 0.0  ;;  %v324_v31 = vpack.c.bf16 %v309_v33, %v308_v37  ;;  %v322_v40 = vld [vmem:[%s654_s3] sm:$0x1] }
  0xe6   :  { %v294_v54 = vpop.f32.mrf.mxu0 }
  0xe7   :  { %v321_v57 = vmax.f32 %v303_v53, 0.0  ;;  %v295_v58 = vadd.f32 %v294_v54, %v126_v38  ;;  %v307_v38 = vmax.f32 %v247_v34, 0.0 }
  0xe9   :  { %v319_v61 = vmax.f32 %v295_v58, 0.0  ;;  %v330_v62 = vpack.c.bf16 %v321_v57, %v320_v55  ;;  %v323_v29 = vpack.c.bf16 %v307_v38, %v306_v39 }
  0xeb   :  { %451 = vmatpush3.bf16.msra.mxu1 %v330_v62  ;;  %v329_v4 = vpack.c.bf16 %v319_v61, %v318_v1 }
  0xec   :  { %452 = vmatprep.subr.bf16.mxu1 %v508_v28 }
  0xef   :  { %453 = vmatpush3.bf16.msra.mxu1 %v329_v4 }
  0xf0   :  { %454 = vmatprep.subr.bf16.mxu1 %v508_v28 }
  0xf3   :  { %455 = vmatpush3.bf16.msra.mxu1 %v328_v10 }
  0xf4   :  { %456 = vmatprep.subr.bf16.mxu1 %v508_v28 }
  0xf7   :  { %457 = vmatpush3.bf16.msra.mxu1 %v327_v17 }
  0xf8   :  { %458 = vmatprep.subr.bf16.mxu1 %v508_v28 }
  0xfb   :  { %459 = vmatpush3.bf16.msra.mxu1 %v326_v22 }
  0xfc   :  { %460 = vmatprep.subr.bf16.mxu1 %v508_v28 }
  0xff   :  { %461 = vmatpush3.bf16.msra.mxu1 %v325_v35 }
 0x100   :  { %462 = vmatprep.subr.bf16.mxu1 %v508_v28 }
 0x103   :  { %463 = vmatpush3.bf16.msra.mxu1 %v324_v31 }
 0x104   :  { %464 = vmatprep.subr.bf16.mxu1 %v508_v28 }
 0x107   :  { %465 = vmatpush3.bf16.msra.mxu1 %v323_v29 }
 0x10a   :  { %467 = vmatmul.mubr.bf16.vlgmr.msra.gmra.mxu1 %v322_v40 }
 0x1ca   :  { %v375_v44 = vpop.f32.mrf.mxu1 }
 0x1cb   :  { %v376_v45 = vadd.f32 %v375_v44, %v340_v43 }
 0x1cc   :  { %v468_v46 = vpop.f32.mrf.mxu1 }
 0x1cd   :  { %382 = vst.msk [vmem:[#allocation3] sm:$0x1] %vm381_vm2, %v376_v45 }
 0x1ce   :  { %v378_v28 = vpop.f32.mrf.mxu1 }
 0x1cf   :  { %496 = shalt.err (!%p493_p4)
}
 0x1d0   :  { %392 = dma.vmem_to_hbm [thread:$0]  %s390_s17, 16, %s656_s5, [#allocation4]   ;;  %v469_v47 = vpop.f32.mrf.mxu1 }
 0x1d1   :  { %505 = dma.done.wait [#allocation4], 16  }
 0x1d2   :  { %506 = vsyncadd [#allocation4], 4294967280 }
 0x1d3   :  { %396 = vsyncpa [#allocation4], 1 }

</bundles_post_ra>
